<compile_context>
chip_gen: v5e
topology: v5e:2x2
jax: 0.10.0
libtpu: 0.0.40
codegen_flags: <defaults>
</compile_context>

<pallas_src>
import math

import jax
import jax.numpy as jnp
from jax.experimental import pallas as pl
from jax.experimental.pallas import tpu as pltpu

_MiB = 1024 * 1024
_SMALL_FAST_PATH_BYTES = 2 * _MiB


def _fill_kernel(dist_ref, out_ref):
    """Broadcast the (1, tc) packed-dist row across all sublanes of the block."""
    out_ref[...] = jnp.broadcast_to(dist_ref[...], out_ref.shape)


def _round_up(x, m):
    return ((x + m - 1) // m) * m


def _vmem_capacity_bytes():
    """Trace-time VMEM capacity; conservative 64 MiB fallback (safe everywhere)."""
    try:
        info = pltpu.get_tpu_info()
        cap = getattr(info, "vmem_capacity_bytes", None)
        if cap:
            return int(cap)
    except Exception:
        pass
    return 64 * _MiB


def _pick_divisor_group(r, d, max_cols=4096):
    """Largest divisor g of r with g*d <= max_cols (lane-dense packing factor)."""
    limit = min(r, max(1, max_cols // d))
    for g in range(limit, 0, -1):
        if r % g == 0:
            return g
    return 1


def _pallas_fill_2d(dist_row, rows, cols, out_dtype):
    """Fill a (rows, cols) array with dist_row (shape (1, cols)) repeated on every row."""
    itemsize = jnp.dtype(out_dtype).itemsize
    pack = 8 * max(1, 4 // itemsize)          # sublane packing: 8 f32 / 16 bf16 / 32 i8

    vmem_cap = _vmem_capacity_bytes()
    small_vmem = vmem_cap <= 96 * _MiB        # v7x-class (64 MiB/TC) or unknown
    # Bigger blocks amortize the ~0.35 us per-grid-step overhead; v7x's 3.2 TB/s
    # HBM needs ~14 MiB blocks, 128 MiB-VMEM chips are happy at 8 MiB.
    target = 14 * _MiB if small_vmem else 8 * _MiB

    row_bytes = cols * itemsize
    if row_bytes * pack <= target:
        # Normal case: full-width rows, tile over a row grid.
        tc = cols
        tr = max(pack, (target // row_bytes) // pack * pack)
        if tr >= rows:
            tr = rows
        # Keep >= 2 row blocks on v7x-class chips so ("parallel", ...) can use
        # both TensorCores (a grid of (1,) would leave one TC idle).
        if small_vmem and pl.cdiv(rows, tr) == 1 and rows >= 2 * pack:
            tr = _round_up(pl.cdiv(rows, 2), pack)
    else:
        # Very wide last dim: add a column grid axis so the minimum block
        # (8 rows x cols) never blows the VMEM budget.
        budget = min(target, 8 * _MiB)
        tr = pack
        tc = max(128, (budget // (pack * itemsize)) // 128 * 128)

    nr = pl.cdiv(rows, tr)
    nc = pl.cdiv(cols, tc)

    # Derive the scoped-VMEM limit from the actual padded block footprints
    # (covers double buffering; v5e's 16 MiB scoped default is too small for
    # 8 MiB blocks, v7x's 32 MiB default is too small for 14 MiB blocks).
    out_blk_bytes = _round_up(max(tr, 1), 8) * _round_up(tc, 128) * itemsize
    in_blk_bytes = 8 * _round_up(tc, 128) * itemsize   # (1, tc) pads to 8 sublanes
    need = 2 * (out_blk_bytes + in_blk_bytes)
    vmem_limit = need + max(need // 2, 4 * _MiB)
    vmem_limit = min(vmem_limit, 48 * _MiB if small_vmem else 96 * _MiB)
    vmem_limit = max(vmem_limit, 16 * _MiB)

    return pl.pallas_call(
        _fill_kernel,
        out_shape=jax.ShapeDtypeStruct((rows, cols), out_dtype),
        grid=(nr, nc),
        in_specs=[pl.BlockSpec((1, tc), lambda i, j: (0, j))],
        out_specs=pl.BlockSpec((tr, tc), lambda i, j: (i, j)),
        compiler_params=pltpu.CompilerParams(
            dimension_semantics=("parallel", "parallel"),
            vmem_limit_bytes=int(vmem_limit),
        ),
        cost_estimate=pl.CostEstimate(
            flops=0,
            transcendentals=0,
            bytes_accessed=rows * cols * itemsize + cols * itemsize,
        ),
    )(dist_row)


def emission_initializer(dist, shape, dtype=None):
    """Pallas equivalent of EmissionInitializer.forward(shape, dtype)."""
    dist = jnp.asarray(dist)
    shape = tuple(int(s) for s in shape)
    d = shape[-1]
    assert d == dist.shape[0], (
        f"last dim of shape must match dist size: shape={shape} dist={dist.shape[0]}"
    )
    out_dtype = jnp.dtype(dtype) if dtype is not None else jnp.dtype(dist.dtype)
    dist = dist.astype(out_dtype)
    # TODO(synk): torch `device=` placement arg has no in-kernel equivalent; JAX
    # handles device placement outside the kernel.

    r = math.prod(shape[:-1])          # rows to tile dist over (1 if shape is 1-D)
    if r == 0 or d == 0:
        return jnp.zeros(shape, out_dtype)

    total_bytes = r * d * out_dtype.itemsize
    if total_bytes <= _SMALL_FAST_PATH_BYTES:
        # Tiny fills: custom-call launch + one grid step would dominate; an XLA
        # broadcast is numerically identical and strictly cheaper.
        return jnp.broadcast_to(dist[None, :], (r, d)).reshape(shape)

    g = _pick_divisor_group(r, d)
    if g * d >= 128 or g == r:
        # Lane-dense divisor path: (r, d) -> (r//g, g*d), packed once here.
        rows, cols = r // g, g * d
        dist_row = jnp.tile(dist, g).reshape(1, cols)
        out2d = _pallas_fill_2d(dist_row, rows, cols, out_dtype)
        return out2d.reshape(shape)

    # Rare: prod(leading dims) has no divisor giving >= 128 lanes (e.g. prime r
    # with small d).  Fill the bulk lane-dense, finish the < g leftover rows
    # with a tiny broadcast, and join flat (one extra copy of the bulk — still
    # far cheaper than masked narrow stores over the whole array).
    g2 = max(1, min(r, 2048 // d))
    bulk_rows = r // g2
    rem = r - bulk_rows * g2
    dist_row = jnp.tile(dist, g2).reshape(1, g2 * d)
    bulk = _pallas_fill_2d(dist_row, bulk_rows, g2 * d, out_dtype)
    tail = jnp.broadcast_to(dist[None, :], (rem, d)).astype(out_dtype)
    flat = jnp.concatenate([bulk.reshape(-1), tail.reshape(-1)])
    return flat.reshape(shape)


def emission_initializer_ref(dist, shape, dtype=None):
    """Pure-JAX reference mirroring the PyTorch forward exactly."""
    dist = jnp.asarray(dist)
    if dtype is not None:
        dist = dist.astype(dtype)
    shape = tuple(int(s) for s in shape)
    r = math.prod(shape[:-1])
    return jnp.tile(dist, int(r)).reshape(shape)


if __name__ == "__main__":
    key = jax.random.PRNGKey(0)

    # Small deterministic emission distribution (last-dim size 16).
    d = 16
    dist = jax.nn.softmax(jax.random.normal(key, (d,), dtype=jnp.float32))

    # Case 1: tiny multi-dim shape, explicit dtype (fast path).
    shape1 = (2, 4, 8, d)
    out1 = jax.block_until_ready(emission_initializer(dist, shape1, dtype=jnp.float32))
    ref1 = emission_initializer_ref(dist, shape1, dtype=jnp.float32)
    assert out1.shape == shape1 and out1.dtype == jnp.float32
    assert jnp.allclose(out1, ref1, atol=1e-6, rtol=1e-6), "mismatch vs reference (case 1)"
    assert jnp.allclose(out1[1, 2, 3], dist, atol=1e-6), "row != dist"

    # Case 2: large enough to exercise the Pallas lane-dense fill (divisor path).
    shape2 = (1024, 48, d)    # 3 MiB f32
    out2 = jax.block_until_ready(emission_initializer(dist, shape2))
    ref2 = emission_initializer_ref(dist, shape2)
    assert out2.shape == shape2
    assert jnp.allclose(out2, ref2, atol=1e-6, rtol=1e-6), "mismatch vs reference (case 2)"

    # Case 3: prime leading-dim product -> lane-dense bulk + remainder path.
    shape3 = (65537, d)       # 65537 is prime; ~4 MiB f32
    out3 = jax.block_until_ready(emission_initializer(dist, shape3))
    ref3 = emission_initializer_ref(dist, shape3)
    assert out3.shape == shape3
    assert jnp.allclose(out3, ref3, atol=1e-6, rtol=1e-6), "mismatch vs reference (case 3)"

    # Case 4: 1-D shape (prod of leading dims == 1).
    out4 = jax.block_until_ready(emission_initializer(dist, (d,)))
    assert jnp.allclose(out4, dist, atol=1e-6)

    print("KERNEL_OK")
</pallas_src>

<mosaic_0001>
module attributes {stable_mosaic.version = 11 : i64} {
  func.func @_fill_kernel(%arg0: i32, %arg1: i32, %arg2: memref<1x4096xf32, #tpu.memory_space<vmem>>, %arg3: memref<96x4096xf32, #tpu.memory_space<vmem>>) attributes {dimension_semantics = [#tpu.dimension_semantics<parallel>, #tpu.dimension_semantics<parallel>], iteration_bounds = array<i64: 2, 1>, scalar_prefetch = 0 : i64, scratch_operands = 0 : i64, tpu.core_type = #tpu.core_type<tc>, window_params = [{transform_indices = @transform_0, window_bounds = array<i64: 1, 4096>}, {transform_indices = @transform_1, window_bounds = array<i64: 96, 4096>}]} {
    %c0 = arith.constant 0 : index
    %c0_0 = arith.constant 0 : index
    %0 = vector.load %arg2[%c0, %c0_0] : memref<1x4096xf32, #tpu.memory_space<vmem>>, vector<1x4096xf32>
    %1 = vector.shape_cast %0 : vector<1x4096xf32> to vector<1x4096xf32>
    %2 = vector.broadcast %1 : vector<1x4096xf32> to vector<96x4096xf32>
    %c0_1 = arith.constant 0 : index
    %c0_2 = arith.constant 0 : index
    %3 = vector.load %arg3[%c0_1, %c0_2] : memref<96x4096xf32, #tpu.memory_space<vmem>>, vector<96x4096xf32>
    tpu.vector_store %arg3[%c0_1, %c0_2], %2 {strides = array<i32>} : memref<96x4096xf32, #tpu.memory_space<vmem>>, vector<96x4096xf32>,
    return
  }
  func.func @transform_0(%arg0: i32, %arg1: i32) -> (i32, i32) {
    %c0_i32 = arith.constant 0 : i32
    %c0_i32_0 = arith.constant 0 : i32
    return %c0_i32, %arg1 : i32, i32
  }
  func.func @transform_1(%arg0: i32, %arg1: i32) -> (i32, i32) {
    %c0_i32 = arith.constant 0 : i32
    return %arg0, %arg1 : i32, i32
  }
}

</mosaic_0001>

<bundles_post_ra>
// kernel: tpu_custom_call.1
= control target key start
LH: loop header
LB: loop body
LE: loop exit
PB: predicated region body
PF: predicated region fallthrough
CT: control target
= control target key end

     0   :  { %6 = vsyncpa [#allocation3], 0  ;;  %s1419_s0 = inlined_call_operand.hbm [shape: f32[1,4096], index: 0, kind: input, shape index: {}]   ;;  %s1420_s1 = inlined_call_operand.hbm [shape: f32[192,4096], index: 1, kind: output, shape index: {}]  }
   0x1   :  { %7 = vsyncpa [#allocation4], 0 }
   0x2   :  { %9 = vsyncpa [#allocation4 + $0x1], 0  ;;  %s893_s6 = smov 0   ;;  %s895_s7 = smov 0  }
   0x3   :  { %s897_s8 = smov 0   ;;  %s899_s9 = smov 0  }
   0x4   :  { %s901_s10 = smov 0   ;;  %s903_s11 = smov 0  }
   0x5 LB: > { %s684_s12 = sadd.s32 4294967295, %s878_s11   ;;  %s685_s13 = sadd.s32 4294967294, %s878_s11   ;;  %s878_s11 = sphi %s903_s11, %s15_s11   ;;  %s874_s10 = sphi %s901_s10, %s1427_s10   ;;  %s870_s9 = sphi %s899_s9, %s1426_s9   ;;  %s866_s8 = sphi %s897_s8, %s1425_s8   ;;  %s862_s7 = sphi %s895_s7, %s1424_s7   ;;  %s858_s6 = sphi %s893_s6, %s1423_s6  }
   0x6   : > { %s27_s14 = sadd.s32 1, %s874_s10  ;;  %s62_s15 = sadd.s32 1, %s866_s8 }
   0x7   : > { %p29_p0 = scmp.ge.s32.totalorder %s27_s14, 2  ;;  %p72_p1 = scmp.ne.s32.totalorder %s866_s8, %s862_s7 }
   0x8   : > { %p73_p2 = scmp.eq.s32.totalorder %s684_s12, 1  ;;  %p78_p3 = scmp.ne.s32.totalorder %s862_s7, %s858_s6 }
   0x9   : > { %s1429_s14 = smov (%p29_p0, %s27_s14), 0  ;;  %p79_p5 = scmp.eq.s32.totalorder %s685_s13, 1 }
   0xa   : > { %p933_p4 = por %p73_p2, %p72_p1  ;;  %s57_s17 = ssub.s32 %s874_s10, %s1429_s14 }
   0xb   : > { %p686_p6 = scmp.ge.s32.totalorder %s878_s11, 1  ;;  %p60_p7 = scmp.eq.s32.totalorder %s57_s17, 0 }
   0xc   : > { %p940_p8 = por %p79_p5, %p78_p3  ;;  %p86_p9 = scmp.lt.s32.totalorder %s878_s11, 3 }
   0xd   : > { %s946_s19 = scalar_select %p60_p7, %s866_s8, %s62_s15  }
   0xe   : > { %p87_p10 = pnand %p686_p6, %p86_p9  ;;  %p712_p11 = scmp.eq.s32.totalorder %s684_s12, 0 }
   0xf   : > { %s100_s22 = sshll.u32 %s1419_s0, 4  ;;  %s880_s23 = smov [#allocation2]   ;;  %s101_s22 = int_to_ptr.hbm [resolvable:$true] %s100_s22 }
  0x10   : > { %p704_p12 = pneg %p87_p10  ;;  %s102_s24 = sshll.u32 %s880_s23, 4  ;;  %s103_s24 = int_to_ptr.vmem [resolvable:$true] %s102_s24 }
  0x11   : > { %115 = sbr.rel (%p87_p10) target bundleno = 414 (0x19e), region = 24 }
  0x12   : > { %p705_p13 = pnand %p712_p11, %p704_p12 }
  0x14   : > { %707 = dma.hbm_to_vmem [thread:$0]  (!%p705_p13), %s101_s22, 512, %s103_s24, [#allocation3]  }
  0x16   : > { %849 = dma.done.wait (%p712_p11), [#allocation3], 512  }
  0x17   : > { %851 = vsyncadd (%p712_p11), [#allocation3], 4294966784  ;;  %s128_s25 = sand.u32 1, %s862_s7   ;;  %v954_v0 = vld [vmem:[#allocation2] sm:$0xff]  ;;  %v1056_v9 = vld [vmem:[#allocation2 + $0x8] sm:$0xff]  ;;  %s696_s28 = smul.u32 3072, %s870_s9 }
  0x18   : > { %s697_s26 = smul.u32 3072, %s128_s25  ;;  %v142_v1 = vperm.slane %v954_v0, 0  ;;  %v143_v2 = vperm.slane %v954_v0, 1  ;;  %v144_v3 = vperm.slane %v954_v0, 2  ;;  %v145_v4 = vperm.slane %v954_v0, 3  ;;  %v1162_v18 = vld [vmem:[#allocation2 + $0x10] sm:$0xff] }
  0x19   : > { %v146_v5 = vperm.slane %v954_v0, 4  ;;  %v147_v6 = vperm.slane %v954_v0, 5  ;;  %v148_v7 = vperm.slane %v954_v0, 6  ;;  %v149_v8 = vperm.slane %v954_v0, 7  ;;  %v1268_v27 = vld [vmem:[#allocation2 + $0x18] sm:$0xff]  ;;  %s605_s2 = scalar_lea.hbm %s1420_s1, %s696_s28  ;;  %s591_s5 = scalar_lea.sflag [#allocation4], %s128_s25 }
  0x1a   : > { %s957_s27 = scalar_lea.vmem [#allocation5], %s697_s26  ;;  %v150_v10 = vperm.slane %v1056_v9, 0  ;;  %v151_v11 = vperm.slane %v1056_v9, 1  ;;  %v152_v12 = vperm.slane %v1056_v9, 2  ;;  %v153_v13 = vperm.slane %v1056_v9, 3  ;;  %s608_s4 = sshll.u32 %s605_s2, 4  ;;  %s609_s4 = int_to_ptr.hbm [resolvable:$true] %s608_s4 }
  0x1b   : > { %206 = vst [vmem:[%s957_s27] sm:$0xff] %v142_v1  ;;  %v154_v14 = vperm.slane %v1056_v9, 4  ;;  %v155_v15 = vperm.slane %v1056_v9, 5  ;;  %v156_v16 = vperm.slane %v1056_v9, 6  ;;  %v157_v17 = vperm.slane %v1056_v9, 7  ;;  %s606_s3 = sshll.u32 %s957_s27, 4  ;;  %s810_s9 = sshra.s32 %s609_s4, 4  ;;  %s607_s3 = int_to_ptr.vmem [resolvable:$true] %s606_s3  ;;  %s811_s9 = int_to_ptr.hbm [resolvable:$true] %s810_s9 }
  0x1c   : > { %238 = vst [vmem:[%s957_s27 + $0x100] sm:$0xff] %v142_v1  ;;  %v158_v19 = vperm.slane %v1162_v18, 0  ;;  %v159_v20 = vperm.slane %v1162_v18, 1  ;;  %v160_v21 = vperm.slane %v1162_v18, 2  ;;  %v161_v22 = vperm.slane %v1162_v18, 3  ;;  %s812_s12 = scalar_lea.hbm %s811_s9, 3072  ;;  %p817_p3 = scmp.lt.s32.totalorder %s811_s9, %s1420_s1 }
  0x1d   : > { %270 = vst [vmem:[%s957_s27 + $0x200] sm:$0xff] %v142_v1  ;;  %v162_v23 = vperm.slane %v1162_v18, 4  ;;  %v163_v24 = vperm.slane %v1162_v18, 5  ;;  %v164_v25 = vperm.slane %v1162_v18, 6  ;;  %v165_v26 = vperm.slane %v1162_v18, 7  ;;  %p813_p0 = scmp.ne.s32.totalorder %s811_s9, %s812_s12  ;;  %s816_s17 = scalar_lea.hbm %s1420_s1, 6144 }
  0x1e   : > { %302 = vst [vmem:[%s957_s27 + $0x300] sm:$0xff] %v142_v1  ;;  %v166_v28 = vperm.slane %v1268_v27, 0  ;;  %v167_v29 = vperm.slane %v1268_v27, 1  ;;  %v168_v30 = vperm.slane %v1268_v27, 2  ;;  %v169_v31 = vperm.slane %v1268_v27, 3  ;;  %p818_p5 = scmp.lt.s32.totalorder %s816_s17, %s812_s12 }
  0x1f   : > { %334 = vst [vmem:[%s957_s27 + $0x400] sm:$0xff] %v142_v1  ;;  %v170_v32 = vperm.slane %v1268_v27, 4  ;;  %v171_v33 = vperm.slane %v1268_v27, 5  ;;  %v172_v34 = vperm.slane %v1268_v27, 6  ;;  %v173_v35 = vperm.slane %v1268_v27, 7  ;;  %p814_p1 = pnand %p813_p0, %p933_p4 }
  0x20   : > { %366 = vst [vmem:[%s957_s27 + $0x500] sm:$0xff] %v142_v1  ;;  %p819_p6 = por %p818_p5, %p817_p3 }
  0x21   : > { %398 = vst [vmem:[%s957_s27 + $0x600] sm:$0xff] %v142_v1  ;;  %p815_p2 = pneg %p814_p1 }
  0x22   : > { %430 = vst [vmem:[%s957_s27 + $0x700] sm:$0xff] %v142_v1 }
  0x23   : > { %462 = vst [vmem:[%s957_s27 + $0x800] sm:$0xff] %v142_v1  ;;  %p820_p7 = pnand %p819_p6, %p815_p2 }
  0x24   : > { %494 = vst [vmem:[%s957_s27 + $0x900] sm:$0xff] %v142_v1 }
  0x25   : > { %526 = vst [vmem:[%s957_s27 + $0xa00] sm:$0xff] %v142_v1 }
  0x26   : > { %558 = vst [vmem:[%s957_s27 + $0xb00] sm:$0xff] %v142_v1 }
  0x27   : > { %207 = vst [vmem:[%s957_s27 + $0x8] sm:$0xff] %v143_v2 }
  0x28   : > { %239 = vst [vmem:[%s957_s27 + $0x108] sm:$0xff] %v143_v2 }
  0x29   : > { %271 = vst [vmem:[%s957_s27 + $0x208] sm:$0xff] %v143_v2 }
  0x2a   : > { %303 = vst [vmem:[%s957_s27 + $0x308] sm:$0xff] %v143_v2 }
  0x2b   : > { %335 = vst [vmem:[%s957_s27 + $0x408] sm:$0xff] %v143_v2 }
  0x2c   : > { %367 = vst [vmem:[%s957_s27 + $0x508] sm:$0xff] %v143_v2 }
  0x2d   : > { %399 = vst [vmem:[%s957_s27 + $0x608] sm:$0xff] %v143_v2 }
  0x2e   : > { %431 = vst [vmem:[%s957_s27 + $0x708] sm:$0xff] %v143_v2 }
  0x2f   : > { %463 = vst [vmem:[%s957_s27 + $0x808] sm:$0xff] %v143_v2 }
  0x30   : > { %495 = vst [vmem:[%s957_s27 + $0x908] sm:$0xff] %v143_v2 }
  0x31   : > { %527 = vst [vmem:[%s957_s27 + $0xa08] sm:$0xff] %v143_v2 }
  0x32   : > { %559 = vst [vmem:[%s957_s27 + $0xb08] sm:$0xff] %v143_v2 }
  0x33   : > { %208 = vst [vmem:[%s957_s27 + $0x10] sm:$0xff] %v144_v3 }
  0x34   : > { %240 = vst [vmem:[%s957_s27 + $0x110] sm:$0xff] %v144_v3 }
  0x35   : > { %272 = vst [vmem:[%s957_s27 + $0x210] sm:$0xff] %v144_v3 }
  0x36   : > { %304 = vst [vmem:[%s957_s27 + $0x310] sm:$0xff] %v144_v3 }
  0x37   : > { %336 = vst [vmem:[%s957_s27 + $0x410] sm:$0xff] %v144_v3 }
  0x38   : > { %368 = vst [vmem:[%s957_s27 + $0x510] sm:$0xff] %v144_v3 }
  0x39   : > { %400 = vst [vmem:[%s957_s27 + $0x610] sm:$0xff] %v144_v3 }
  0x3a   : > { %432 = vst [vmem:[%s957_s27 + $0x710] sm:$0xff] %v144_v3 }
  0x3b   : > { %464 = vst [vmem:[%s957_s27 + $0x810] sm:$0xff] %v144_v3 }
  0x3c   : > { %496 = vst [vmem:[%s957_s27 + $0x910] sm:$0xff] %v144_v3 }
  0x3d   : > { %528 = vst [vmem:[%s957_s27 + $0xa10] sm:$0xff] %v144_v3 }
  0x3e   : > { %560 = vst [vmem:[%s957_s27 + $0xb10] sm:$0xff] %v144_v3 }
  0x3f   : > { %209 = vst [vmem:[%s957_s27 + $0x18] sm:$0xff] %v145_v4 }
  0x40   : > { %241 = vst [vmem:[%s957_s27 + $0x118] sm:$0xff] %v145_v4 }
  0x41   : > { %273 = vst [vmem:[%s957_s27 + $0x218] sm:$0xff] %v145_v4 }
  0x42   : > { %305 = vst [vmem:[%s957_s27 + $0x318] sm:$0xff] %v145_v4 }
  0x43   : > { %337 = vst [vmem:[%s957_s27 + $0x418] sm:$0xff] %v145_v4 }
  0x44   : > { %369 = vst [vmem:[%s957_s27 + $0x518] sm:$0xff] %v145_v4 }
  0x45   : > { %401 = vst [vmem:[%s957_s27 + $0x618] sm:$0xff] %v145_v4 }
  0x46   : > { %433 = vst [vmem:[%s957_s27 + $0x718] sm:$0xff] %v145_v4 }
  0x47   : > { %465 = vst [vmem:[%s957_s27 + $0x818] sm:$0xff] %v145_v4 }
  0x48   : > { %497 = vst [vmem:[%s957_s27 + $0x918] sm:$0xff] %v145_v4 }
  0x49   : > { %529 = vst [vmem:[%s957_s27 + $0xa18] sm:$0xff] %v145_v4 }
  0x4a   : > { %561 = vst [vmem:[%s957_s27 + $0xb18] sm:$0xff] %v145_v4 }
  0x4b   : > { %210 = vst [vmem:[%s957_s27 + $0x20] sm:$0xff] %v146_v5 }
  0x4c   : > { %242 = vst [vmem:[%s957_s27 + $0x120] sm:$0xff] %v146_v5 }
  0x4d   : > { %274 = vst [vmem:[%s957_s27 + $0x220] sm:$0xff] %v146_v5 }
  0x4e   : > { %306 = vst [vmem:[%s957_s27 + $0x320] sm:$0xff] %v146_v5 }
  0x4f   : > { %338 = vst [vmem:[%s957_s27 + $0x420] sm:$0xff] %v146_v5 }
  0x50   : > { %370 = vst [vmem:[%s957_s27 + $0x520] sm:$0xff] %v146_v5 }
  0x51   : > { %402 = vst [vmem:[%s957_s27 + $0x620] sm:$0xff] %v146_v5 }
  0x52   : > { %434 = vst [vmem:[%s957_s27 + $0x720] sm:$0xff] %v146_v5 }
  0x53   : > { %466 = vst [vmem:[%s957_s27 + $0x820] sm:$0xff] %v146_v5 }
  0x54   : > { %498 = vst [vmem:[%s957_s27 + $0x920] sm:$0xff] %v146_v5 }
  0x55   : > { %530 = vst [vmem:[%s957_s27 + $0xa20] sm:$0xff] %v146_v5 }
  0x56   : > { %562 = vst [vmem:[%s957_s27 + $0xb20] sm:$0xff] %v146_v5 }
  0x57   : > { %211 = vst [vmem:[%s957_s27 + $0x28] sm:$0xff] %v147_v6 }
  0x58   : > { %243 = vst [vmem:[%s957_s27 + $0x128] sm:$0xff] %v147_v6 }
  0x59   : > { %275 = vst [vmem:[%s957_s27 + $0x228] sm:$0xff] %v147_v6 }
  0x5a   : > { %307 = vst [vmem:[%s957_s27 + $0x328] sm:$0xff] %v147_v6 }
  0x5b   : > { %339 = vst [vmem:[%s957_s27 + $0x428] sm:$0xff] %v147_v6 }
  0x5c   : > { %371 = vst [vmem:[%s957_s27 + $0x528] sm:$0xff] %v147_v6 }
  0x5d   : > { %403 = vst [vmem:[%s957_s27 + $0x628] sm:$0xff] %v147_v6 }
  0x5e   : > { %435 = vst [vmem:[%s957_s27 + $0x728] sm:$0xff] %v147_v6 }
  0x5f   : > { %467 = vst [vmem:[%s957_s27 + $0x828] sm:$0xff] %v147_v6 }
  0x60   : > { %499 = vst [vmem:[%s957_s27 + $0x928] sm:$0xff] %v147_v6 }
  0x61   : > { %531 = vst [vmem:[%s957_s27 + $0xa28] sm:$0xff] %v147_v6 }
  0x62   : > { %563 = vst [vmem:[%s957_s27 + $0xb28] sm:$0xff] %v147_v6 }
  0x63   : > { %212 = vst [vmem:[%s957_s27 + $0x30] sm:$0xff] %v148_v7 }
  0x64   : > { %244 = vst [vmem:[%s957_s27 + $0x130] sm:$0xff] %v148_v7 }
  0x65   : > { %276 = vst [vmem:[%s957_s27 + $0x230] sm:$0xff] %v148_v7 }
  0x66   : > { %308 = vst [vmem:[%s957_s27 + $0x330] sm:$0xff] %v148_v7 }
  0x67   : > { %340 = vst [vmem:[%s957_s27 + $0x430] sm:$0xff] %v148_v7 }
  0x68   : > { %372 = vst [vmem:[%s957_s27 + $0x530] sm:$0xff] %v148_v7 }
  0x69   : > { %404 = vst [vmem:[%s957_s27 + $0x630] sm:$0xff] %v148_v7 }
  0x6a   : > { %436 = vst [vmem:[%s957_s27 + $0x730] sm:$0xff] %v148_v7 }
  0x6b   : > { %468 = vst [vmem:[%s957_s27 + $0x830] sm:$0xff] %v148_v7 }
  0x6c   : > { %500 = vst [vmem:[%s957_s27 + $0x930] sm:$0xff] %v148_v7 }
  0x6d   : > { %532 = vst [vmem:[%s957_s27 + $0xa30] sm:$0xff] %v148_v7 }
  0x6e   : > { %564 = vst [vmem:[%s957_s27 + $0xb30] sm:$0xff] %v148_v7 }
  0x6f   : > { %213 = vst [vmem:[%s957_s27 + $0x38] sm:$0xff] %v149_v8 }
  0x70   : > { %245 = vst [vmem:[%s957_s27 + $0x138] sm:$0xff] %v149_v8 }
  0x71   : > { %277 = vst [vmem:[%s957_s27 + $0x238] sm:$0xff] %v149_v8 }
  0x72   : > { %309 = vst [vmem:[%s957_s27 + $0x338] sm:$0xff] %v149_v8 }
  0x73   : > { %341 = vst [vmem:[%s957_s27 + $0x438] sm:$0xff] %v149_v8 }
  0x74   : > { %373 = vst [vmem:[%s957_s27 + $0x538] sm:$0xff] %v149_v8 }
  0x75   : > { %405 = vst [vmem:[%s957_s27 + $0x638] sm:$0xff] %v149_v8 }
  0x76   : > { %437 = vst [vmem:[%s957_s27 + $0x738] sm:$0xff] %v149_v8 }
  0x77   : > { %469 = vst [vmem:[%s957_s27 + $0x838] sm:$0xff] %v149_v8 }
  0x78   : > { %501 = vst [vmem:[%s957_s27 + $0x938] sm:$0xff] %v149_v8 }
  0x79   : > { %533 = vst [vmem:[%s957_s27 + $0xa38] sm:$0xff] %v149_v8 }
  0x7a   : > { %565 = vst [vmem:[%s957_s27 + $0xb38] sm:$0xff] %v149_v8 }
  0x7b   : > { %214 = vst [vmem:[%s957_s27 + $0x40] sm:$0xff] %v150_v10 }
  0x7c   : > { %246 = vst [vmem:[%s957_s27 + $0x140] sm:$0xff] %v150_v10 }
  0x7d   : > { %278 = vst [vmem:[%s957_s27 + $0x240] sm:$0xff] %v150_v10 }
  0x7e   : > { %310 = vst [vmem:[%s957_s27 + $0x340] sm:$0xff] %v150_v10 }
  0x7f   : > { %342 = vst [vmem:[%s957_s27 + $0x440] sm:$0xff] %v150_v10 }
  0x80   : > { %374 = vst [vmem:[%s957_s27 + $0x540] sm:$0xff] %v150_v10 }
  0x81   : > { %406 = vst [vmem:[%s957_s27 + $0x640] sm:$0xff] %v150_v10 }
  0x82   : > { %438 = vst [vmem:[%s957_s27 + $0x740] sm:$0xff] %v150_v10 }
  0x83   : > { %470 = vst [vmem:[%s957_s27 + $0x840] sm:$0xff] %v150_v10 }
  0x84   : > { %502 = vst [vmem:[%s957_s27 + $0x940] sm:$0xff] %v150_v10 }
  0x85   : > { %534 = vst [vmem:[%s957_s27 + $0xa40] sm:$0xff] %v150_v10 }
  0x86   : > { %566 = vst [vmem:[%s957_s27 + $0xb40] sm:$0xff] %v150_v10 }
  0x87   : > { %215 = vst [vmem:[%s957_s27 + $0x48] sm:$0xff] %v151_v11 }
  0x88   : > { %247 = vst [vmem:[%s957_s27 + $0x148] sm:$0xff] %v151_v11 }
  0x89   : > { %279 = vst [vmem:[%s957_s27 + $0x248] sm:$0xff] %v151_v11 }
  0x8a   : > { %311 = vst [vmem:[%s957_s27 + $0x348] sm:$0xff] %v151_v11 }
  0x8b   : > { %343 = vst [vmem:[%s957_s27 + $0x448] sm:$0xff] %v151_v11 }
  0x8c   : > { %375 = vst [vmem:[%s957_s27 + $0x548] sm:$0xff] %v151_v11 }
  0x8d   : > { %407 = vst [vmem:[%s957_s27 + $0x648] sm:$0xff] %v151_v11 }
  0x8e   : > { %439 = vst [vmem:[%s957_s27 + $0x748] sm:$0xff] %v151_v11 }
  0x8f   : > { %471 = vst [vmem:[%s957_s27 + $0x848] sm:$0xff] %v151_v11 }
  0x90   : > { %503 = vst [vmem:[%s957_s27 + $0x948] sm:$0xff] %v151_v11 }
  0x91   : > { %535 = vst [vmem:[%s957_s27 + $0xa48] sm:$0xff] %v151_v11 }
  0x92   : > { %567 = vst [vmem:[%s957_s27 + $0xb48] sm:$0xff] %v151_v11 }
  0x93   : > { %216 = vst [vmem:[%s957_s27 + $0x50] sm:$0xff] %v152_v12 }
  0x94   : > { %248 = vst [vmem:[%s957_s27 + $0x150] sm:$0xff] %v152_v12 }
  0x95   : > { %280 = vst [vmem:[%s957_s27 + $0x250] sm:$0xff] %v152_v12 }
  0x96   : > { %312 = vst [vmem:[%s957_s27 + $0x350] sm:$0xff] %v152_v12 }
  0x97   : > { %344 = vst [vmem:[%s957_s27 + $0x450] sm:$0xff] %v152_v12 }
  0x98   : > { %376 = vst [vmem:[%s957_s27 + $0x550] sm:$0xff] %v152_v12 }
  0x99   : > { %408 = vst [vmem:[%s957_s27 + $0x650] sm:$0xff] %v152_v12 }
  0x9a   : > { %440 = vst [vmem:[%s957_s27 + $0x750] sm:$0xff] %v152_v12 }
  0x9b   : > { %472 = vst [vmem:[%s957_s27 + $0x850] sm:$0xff] %v152_v12 }
  0x9c   : > { %504 = vst [vmem:[%s957_s27 + $0x950] sm:$0xff] %v152_v12 }
  0x9d   : > { %536 = vst [vmem:[%s957_s27 + $0xa50] sm:$0xff] %v152_v12 }
  0x9e   : > { %568 = vst [vmem:[%s957_s27 + $0xb50] sm:$0xff] %v152_v12 }
  0x9f   : > { %217 = vst [vmem:[%s957_s27 + $0x58] sm:$0xff] %v153_v13 }
  0xa0   : > { %249 = vst [vmem:[%s957_s27 + $0x158] sm:$0xff] %v153_v13 }
  0xa1   : > { %281 = vst [vmem:[%s957_s27 + $0x258] sm:$0xff] %v153_v13 }
  0xa2   : > { %313 = vst [vmem:[%s957_s27 + $0x358] sm:$0xff] %v153_v13 }
  0xa3   : > { %345 = vst [vmem:[%s957_s27 + $0x458] sm:$0xff] %v153_v13 }
  0xa4   : > { %377 = vst [vmem:[%s957_s27 + $0x558] sm:$0xff] %v153_v13 }
  0xa5   : > { %409 = vst [vmem:[%s957_s27 + $0x658] sm:$0xff] %v153_v13 }
  0xa6   : > { %441 = vst [vmem:[%s957_s27 + $0x758] sm:$0xff] %v153_v13 }
  0xa7   : > { %473 = vst [vmem:[%s957_s27 + $0x858] sm:$0xff] %v153_v13 }
  0xa8   : > { %505 = vst [vmem:[%s957_s27 + $0x958] sm:$0xff] %v153_v13 }
  0xa9   : > { %537 = vst [vmem:[%s957_s27 + $0xa58] sm:$0xff] %v153_v13 }
  0xaa   : > { %569 = vst [vmem:[%s957_s27 + $0xb58] sm:$0xff] %v153_v13 }
  0xab   : > { %218 = vst [vmem:[%s957_s27 + $0x60] sm:$0xff] %v154_v14 }
  0xac   : > { %250 = vst [vmem:[%s957_s27 + $0x160] sm:$0xff] %v154_v14 }
  0xad   : > { %282 = vst [vmem:[%s957_s27 + $0x260] sm:$0xff] %v154_v14 }
  0xae   : > { %314 = vst [vmem:[%s957_s27 + $0x360] sm:$0xff] %v154_v14 }
  0xaf   : > { %346 = vst [vmem:[%s957_s27 + $0x460] sm:$0xff] %v154_v14 }
  0xb0   : > { %378 = vst [vmem:[%s957_s27 + $0x560] sm:$0xff] %v154_v14 }
  0xb1   : > { %410 = vst [vmem:[%s957_s27 + $0x660] sm:$0xff] %v154_v14 }
  0xb2   : > { %442 = vst [vmem:[%s957_s27 + $0x760] sm:$0xff] %v154_v14 }
  0xb3   : > { %474 = vst [vmem:[%s957_s27 + $0x860] sm:$0xff] %v154_v14 }
  0xb4   : > { %506 = vst [vmem:[%s957_s27 + $0x960] sm:$0xff] %v154_v14 }
  0xb5   : > { %538 = vst [vmem:[%s957_s27 + $0xa60] sm:$0xff] %v154_v14 }
  0xb6   : > { %570 = vst [vmem:[%s957_s27 + $0xb60] sm:$0xff] %v154_v14 }
  0xb7   : > { %219 = vst [vmem:[%s957_s27 + $0x68] sm:$0xff] %v155_v15 }
  0xb8   : > { %251 = vst [vmem:[%s957_s27 + $0x168] sm:$0xff] %v155_v15 }
  0xb9   : > { %283 = vst [vmem:[%s957_s27 + $0x268] sm:$0xff] %v155_v15 }
  0xba   : > { %315 = vst [vmem:[%s957_s27 + $0x368] sm:$0xff] %v155_v15 }
  0xbb   : > { %347 = vst [vmem:[%s957_s27 + $0x468] sm:$0xff] %v155_v15 }
  0xbc   : > { %379 = vst [vmem:[%s957_s27 + $0x568] sm:$0xff] %v155_v15 }
  0xbd   : > { %411 = vst [vmem:[%s957_s27 + $0x668] sm:$0xff] %v155_v15 }
  0xbe   : > { %443 = vst [vmem:[%s957_s27 + $0x768] sm:$0xff] %v155_v15 }
  0xbf   : > { %475 = vst [vmem:[%s957_s27 + $0x868] sm:$0xff] %v155_v15 }
  0xc0   : > { %507 = vst [vmem:[%s957_s27 + $0x968] sm:$0xff] %v155_v15 }
  0xc1   : > { %539 = vst [vmem:[%s957_s27 + $0xa68] sm:$0xff] %v155_v15 }
  0xc2   : > { %571 = vst [vmem:[%s957_s27 + $0xb68] sm:$0xff] %v155_v15 }
  0xc3   : > { %220 = vst [vmem:[%s957_s27 + $0x70] sm:$0xff] %v156_v16 }
  0xc4   : > { %252 = vst [vmem:[%s957_s27 + $0x170] sm:$0xff] %v156_v16 }
  0xc5   : > { %284 = vst [vmem:[%s957_s27 + $0x270] sm:$0xff] %v156_v16 }
  0xc6   : > { %316 = vst [vmem:[%s957_s27 + $0x370] sm:$0xff] %v156_v16 }
  0xc7   : > { %348 = vst [vmem:[%s957_s27 + $0x470] sm:$0xff] %v156_v16 }
  0xc8   : > { %380 = vst [vmem:[%s957_s27 + $0x570] sm:$0xff] %v156_v16 }
  0xc9   : > { %412 = vst [vmem:[%s957_s27 + $0x670] sm:$0xff] %v156_v16 }
  0xca   : > { %444 = vst [vmem:[%s957_s27 + $0x770] sm:$0xff] %v156_v16 }
  0xcb   : > { %476 = vst [vmem:[%s957_s27 + $0x870] sm:$0xff] %v156_v16 }
  0xcc   : > { %508 = vst [vmem:[%s957_s27 + $0x970] sm:$0xff] %v156_v16 }
  0xcd   : > { %540 = vst [vmem:[%s957_s27 + $0xa70] sm:$0xff] %v156_v16 }
  0xce   : > { %572 = vst [vmem:[%s957_s27 + $0xb70] sm:$0xff] %v156_v16 }
  0xcf   : > { %221 = vst [vmem:[%s957_s27 + $0x78] sm:$0xff] %v157_v17 }
  0xd0   : > { %253 = vst [vmem:[%s957_s27 + $0x178] sm:$0xff] %v157_v17 }
  0xd1   : > { %285 = vst [vmem:[%s957_s27 + $0x278] sm:$0xff] %v157_v17 }
  0xd2   : > { %317 = vst [vmem:[%s957_s27 + $0x378] sm:$0xff] %v157_v17 }
  0xd3   : > { %349 = vst [vmem:[%s957_s27 + $0x478] sm:$0xff] %v157_v17 }
  0xd4   : > { %381 = vst [vmem:[%s957_s27 + $0x578] sm:$0xff] %v157_v17 }
  0xd5   : > { %413 = vst [vmem:[%s957_s27 + $0x678] sm:$0xff] %v157_v17 }
  0xd6   : > { %445 = vst [vmem:[%s957_s27 + $0x778] sm:$0xff] %v157_v17 }
  0xd7   : > { %477 = vst [vmem:[%s957_s27 + $0x878] sm:$0xff] %v157_v17 }
  0xd8   : > { %509 = vst [vmem:[%s957_s27 + $0x978] sm:$0xff] %v157_v17 }
  0xd9   : > { %541 = vst [vmem:[%s957_s27 + $0xa78] sm:$0xff] %v157_v17 }
  0xda   : > { %573 = vst [vmem:[%s957_s27 + $0xb78] sm:$0xff] %v157_v17 }
  0xdb   : > { %222 = vst [vmem:[%s957_s27 + $0x80] sm:$0xff] %v158_v19 }
  0xdc   : > { %254 = vst [vmem:[%s957_s27 + $0x180] sm:$0xff] %v158_v19 }
  0xdd   : > { %286 = vst [vmem:[%s957_s27 + $0x280] sm:$0xff] %v158_v19 }
  0xde   : > { %318 = vst [vmem:[%s957_s27 + $0x380] sm:$0xff] %v158_v19 }
  0xdf   : > { %350 = vst [vmem:[%s957_s27 + $0x480] sm:$0xff] %v158_v19 }
  0xe0   : > { %382 = vst [vmem:[%s957_s27 + $0x580] sm:$0xff] %v158_v19 }
  0xe1   : > { %414 = vst [vmem:[%s957_s27 + $0x680] sm:$0xff] %v158_v19 }
  0xe2   : > { %446 = vst [vmem:[%s957_s27 + $0x780] sm:$0xff] %v158_v19 }
  0xe3   : > { %478 = vst [vmem:[%s957_s27 + $0x880] sm:$0xff] %v158_v19 }
  0xe4   : > { %510 = vst [vmem:[%s957_s27 + $0x980] sm:$0xff] %v158_v19 }
  0xe5   : > { %542 = vst [vmem:[%s957_s27 + $0xa80] sm:$0xff] %v158_v19 }
  0xe6   : > { %574 = vst [vmem:[%s957_s27 + $0xb80] sm:$0xff] %v158_v19 }
  0xe7   : > { %223 = vst [vmem:[%s957_s27 + $0x88] sm:$0xff] %v159_v20 }
  0xe8   : > { %255 = vst [vmem:[%s957_s27 + $0x188] sm:$0xff] %v159_v20 }
  0xe9   : > { %287 = vst [vmem:[%s957_s27 + $0x288] sm:$0xff] %v159_v20 }
  0xea   : > { %319 = vst [vmem:[%s957_s27 + $0x388] sm:$0xff] %v159_v20 }
  0xeb   : > { %351 = vst [vmem:[%s957_s27 + $0x488] sm:$0xff] %v159_v20 }
  0xec   : > { %383 = vst [vmem:[%s957_s27 + $0x588] sm:$0xff] %v159_v20 }
  0xed   : > { %415 = vst [vmem:[%s957_s27 + $0x688] sm:$0xff] %v159_v20 }
  0xee   : > { %447 = vst [vmem:[%s957_s27 + $0x788] sm:$0xff] %v159_v20 }
  0xef   : > { %479 = vst [vmem:[%s957_s27 + $0x888] sm:$0xff] %v159_v20 }
  0xf0   : > { %511 = vst [vmem:[%s957_s27 + $0x988] sm:$0xff] %v159_v20 }
  0xf1   : > { %543 = vst [vmem:[%s957_s27 + $0xa88] sm:$0xff] %v159_v20 }
  0xf2   : > { %575 = vst [vmem:[%s957_s27 + $0xb88] sm:$0xff] %v159_v20 }
  0xf3   : > { %224 = vst [vmem:[%s957_s27 + $0x90] sm:$0xff] %v160_v21 }
  0xf4   : > { %256 = vst [vmem:[%s957_s27 + $0x190] sm:$0xff] %v160_v21 }
  0xf5   : > { %288 = vst [vmem:[%s957_s27 + $0x290] sm:$0xff] %v160_v21 }
  0xf6   : > { %320 = vst [vmem:[%s957_s27 + $0x390] sm:$0xff] %v160_v21 }
  0xf7   : > { %352 = vst [vmem:[%s957_s27 + $0x490] sm:$0xff] %v160_v21 }
  0xf8   : > { %384 = vst [vmem:[%s957_s27 + $0x590] sm:$0xff] %v160_v21 }
  0xf9   : > { %416 = vst [vmem:[%s957_s27 + $0x690] sm:$0xff] %v160_v21 }
  0xfa   : > { %448 = vst [vmem:[%s957_s27 + $0x790] sm:$0xff] %v160_v21 }
  0xfb   : > { %480 = vst [vmem:[%s957_s27 + $0x890] sm:$0xff] %v160_v21 }
  0xfc   : > { %512 = vst [vmem:[%s957_s27 + $0x990] sm:$0xff] %v160_v21 }
  0xfd   : > { %544 = vst [vmem:[%s957_s27 + $0xa90] sm:$0xff] %v160_v21 }
  0xfe   : > { %576 = vst [vmem:[%s957_s27 + $0xb90] sm:$0xff] %v160_v21 }
  0xff   : > { %225 = vst [vmem:[%s957_s27 + $0x98] sm:$0xff] %v161_v22 }
 0x100   : > { %257 = vst [vmem:[%s957_s27 + $0x198] sm:$0xff] %v161_v22 }
 0x101   : > { %289 = vst [vmem:[%s957_s27 + $0x298] sm:$0xff] %v161_v22 }
 0x102   : > { %321 = vst [vmem:[%s957_s27 + $0x398] sm:$0xff] %v161_v22 }
 0x103   : > { %353 = vst [vmem:[%s957_s27 + $0x498] sm:$0xff] %v161_v22 }
 0x104   : > { %385 = vst [vmem:[%s957_s27 + $0x598] sm:$0xff] %v161_v22 }
 0x105   : > { %417 = vst [vmem:[%s957_s27 + $0x698] sm:$0xff] %v161_v22 }
 0x106   : > { %449 = vst [vmem:[%s957_s27 + $0x798] sm:$0xff] %v161_v22 }
 0x107   : > { %481 = vst [vmem:[%s957_s27 + $0x898] sm:$0xff] %v161_v22 }
 0x108   : > { %513 = vst [vmem:[%s957_s27 + $0x998] sm:$0xff] %v161_v22 }
 0x109   : > { %545 = vst [vmem:[%s957_s27 + $0xa98] sm:$0xff] %v161_v22 }
 0x10a   : > { %577 = vst [vmem:[%s957_s27 + $0xb98] sm:$0xff] %v161_v22 }
 0x10b   : > { %226 = vst [vmem:[%s957_s27 + $0xa0] sm:$0xff] %v162_v23 }
 0x10c   : > { %258 = vst [vmem:[%s957_s27 + $0x1a0] sm:$0xff] %v162_v23 }
 0x10d   : > { %290 = vst [vmem:[%s957_s27 + $0x2a0] sm:$0xff] %v162_v23 }
 0x10e   : > { %322 = vst [vmem:[%s957_s27 + $0x3a0] sm:$0xff] %v162_v23 }
 0x10f   : > { %354 = vst [vmem:[%s957_s27 + $0x4a0] sm:$0xff] %v162_v23 }
 0x110   : > { %386 = vst [vmem:[%s957_s27 + $0x5a0] sm:$0xff] %v162_v23 }
 0x111   : > { %418 = vst [vmem:[%s957_s27 + $0x6a0] sm:$0xff] %v162_v23 }
 0x112   : > { %450 = vst [vmem:[%s957_s27 + $0x7a0] sm:$0xff] %v162_v23 }
 0x113   : > { %482 = vst [vmem:[%s957_s27 + $0x8a0] sm:$0xff] %v162_v23 }
 0x114   : > { %514 = vst [vmem:[%s957_s27 + $0x9a0] sm:$0xff] %v162_v23 }
 0x115   : > { %546 = vst [vmem:[%s957_s27 + $0xaa0] sm:$0xff] %v162_v23 }
 0x116   : > { %578 = vst [vmem:[%s957_s27 + $0xba0] sm:$0xff] %v162_v23 }
 0x117   : > { %227 = vst [vmem:[%s957_s27 + $0xa8] sm:$0xff] %v163_v24 }
 0x118   : > { %259 = vst [vmem:[%s957_s27 + $0x1a8] sm:$0xff] %v163_v24 }
 0x119   : > { %291 = vst [vmem:[%s957_s27 + $0x2a8] sm:$0xff] %v163_v24 }
 0x11a   : > { %323 = vst [vmem:[%s957_s27 + $0x3a8] sm:$0xff] %v163_v24 }
 0x11b   : > { %355 = vst [vmem:[%s957_s27 + $0x4a8] sm:$0xff] %v163_v24 }
 0x11c   : > { %387 = vst [vmem:[%s957_s27 + $0x5a8] sm:$0xff] %v163_v24 }
 0x11d   : > { %419 = vst [vmem:[%s957_s27 + $0x6a8] sm:$0xff] %v163_v24 }
 0x11e   : > { %451 = vst [vmem:[%s957_s27 + $0x7a8] sm:$0xff] %v163_v24 }
 0x11f   : > { %483 = vst [vmem:[%s957_s27 + $0x8a8] sm:$0xff] %v163_v24 }
 0x120   : > { %515 = vst [vmem:[%s957_s27 + $0x9a8] sm:$0xff] %v163_v24 }
 0x121   : > { %547 = vst [vmem:[%s957_s27 + $0xaa8] sm:$0xff] %v163_v24 }
 0x122   : > { %579 = vst [vmem:[%s957_s27 + $0xba8] sm:$0xff] %v163_v24 }
 0x123   : > { %228 = vst [vmem:[%s957_s27 + $0xb0] sm:$0xff] %v164_v25 }
 0x124   : > { %260 = vst [vmem:[%s957_s27 + $0x1b0] sm:$0xff] %v164_v25 }
 0x125   : > { %292 = vst [vmem:[%s957_s27 + $0x2b0] sm:$0xff] %v164_v25 }
 0x126   : > { %324 = vst [vmem:[%s957_s27 + $0x3b0] sm:$0xff] %v164_v25 }
 0x127   : > { %356 = vst [vmem:[%s957_s27 + $0x4b0] sm:$0xff] %v164_v25 }
 0x128   : > { %388 = vst [vmem:[%s957_s27 + $0x5b0] sm:$0xff] %v164_v25 }
 0x129   : > { %420 = vst [vmem:[%s957_s27 + $0x6b0] sm:$0xff] %v164_v25 }
 0x12a   : > { %452 = vst [vmem:[%s957_s27 + $0x7b0] sm:$0xff] %v164_v25 }
 0x12b   : > { %484 = vst [vmem:[%s957_s27 + $0x8b0] sm:$0xff] %v164_v25 }
 0x12c   : > { %516 = vst [vmem:[%s957_s27 + $0x9b0] sm:$0xff] %v164_v25 }
 0x12d   : > { %548 = vst [vmem:[%s957_s27 + $0xab0] sm:$0xff] %v164_v25 }
 0x12e   : > { %580 = vst [vmem:[%s957_s27 + $0xbb0] sm:$0xff] %v164_v25 }
 0x12f   : > { %229 = vst [vmem:[%s957_s27 + $0xb8] sm:$0xff] %v165_v26 }
 0x130   : > { %261 = vst [vmem:[%s957_s27 + $0x1b8] sm:$0xff] %v165_v26 }
 0x131   : > { %293 = vst [vmem:[%s957_s27 + $0x2b8] sm:$0xff] %v165_v26 }
 0x132   : > { %325 = vst [vmem:[%s957_s27 + $0x3b8] sm:$0xff] %v165_v26 }
 0x133   : > { %357 = vst [vmem:[%s957_s27 + $0x4b8] sm:$0xff] %v165_v26 }
 0x134   : > { %389 = vst [vmem:[%s957_s27 + $0x5b8] sm:$0xff] %v165_v26 }
 0x135   : > { %421 = vst [vmem:[%s957_s27 + $0x6b8] sm:$0xff] %v165_v26 }
 0x136   : > { %453 = vst [vmem:[%s957_s27 + $0x7b8] sm:$0xff] %v165_v26 }
 0x137   : > { %485 = vst [vmem:[%s957_s27 + $0x8b8] sm:$0xff] %v165_v26 }
 0x138   : > { %517 = vst [vmem:[%s957_s27 + $0x9b8] sm:$0xff] %v165_v26 }
 0x139   : > { %549 = vst [vmem:[%s957_s27 + $0xab8] sm:$0xff] %v165_v26 }
 0x13a   : > { %581 = vst [vmem:[%s957_s27 + $0xbb8] sm:$0xff] %v165_v26 }
 0x13b   : > { %230 = vst [vmem:[%s957_s27 + $0xc0] sm:$0xff] %v166_v28 }
 0x13c   : > { %262 = vst [vmem:[%s957_s27 + $0x1c0] sm:$0xff] %v166_v28 }
 0x13d   : > { %294 = vst [vmem:[%s957_s27 + $0x2c0] sm:$0xff] %v166_v28 }
 0x13e   : > { %326 = vst [vmem:[%s957_s27 + $0x3c0] sm:$0xff] %v166_v28 }
 0x13f   : > { %358 = vst [vmem:[%s957_s27 + $0x4c0] sm:$0xff] %v166_v28 }
 0x140   : > { %390 = vst [vmem:[%s957_s27 + $0x5c0] sm:$0xff] %v166_v28 }
 0x141   : > { %422 = vst [vmem:[%s957_s27 + $0x6c0] sm:$0xff] %v166_v28 }
 0x142   : > { %454 = vst [vmem:[%s957_s27 + $0x7c0] sm:$0xff] %v166_v28 }
 0x143   : > { %486 = vst [vmem:[%s957_s27 + $0x8c0] sm:$0xff] %v166_v28 }
 0x144   : > { %518 = vst [vmem:[%s957_s27 + $0x9c0] sm:$0xff] %v166_v28 }
 0x145   : > { %550 = vst [vmem:[%s957_s27 + $0xac0] sm:$0xff] %v166_v28 }
 0x146   : > { %582 = vst [vmem:[%s957_s27 + $0xbc0] sm:$0xff] %v166_v28 }
 0x147   : > { %231 = vst [vmem:[%s957_s27 + $0xc8] sm:$0xff] %v167_v29 }
 0x148   : > { %263 = vst [vmem:[%s957_s27 + $0x1c8] sm:$0xff] %v167_v29 }
 0x149   : > { %295 = vst [vmem:[%s957_s27 + $0x2c8] sm:$0xff] %v167_v29 }
 0x14a   : > { %327 = vst [vmem:[%s957_s27 + $0x3c8] sm:$0xff] %v167_v29 }
 0x14b   : > { %359 = vst [vmem:[%s957_s27 + $0x4c8] sm:$0xff] %v167_v29 }
 0x14c   : > { %391 = vst [vmem:[%s957_s27 + $0x5c8] sm:$0xff] %v167_v29 }
 0x14d   : > { %423 = vst [vmem:[%s957_s27 + $0x6c8] sm:$0xff] %v167_v29 }
 0x14e   : > { %455 = vst [vmem:[%s957_s27 + $0x7c8] sm:$0xff] %v167_v29 }
 0x14f   : > { %487 = vst [vmem:[%s957_s27 + $0x8c8] sm:$0xff] %v167_v29 }
 0x150   : > { %519 = vst [vmem:[%s957_s27 + $0x9c8] sm:$0xff] %v167_v29 }
 0x151   : > { %551 = vst [vmem:[%s957_s27 + $0xac8] sm:$0xff] %v167_v29 }
 0x152   : > { %583 = vst [vmem:[%s957_s27 + $0xbc8] sm:$0xff] %v167_v29 }
 0x153   : > { %232 = vst [vmem:[%s957_s27 + $0xd0] sm:$0xff] %v168_v30 }
 0x154   : > { %264 = vst [vmem:[%s957_s27 + $0x1d0] sm:$0xff] %v168_v30 }
 0x155   : > { %296 = vst [vmem:[%s957_s27 + $0x2d0] sm:$0xff] %v168_v30 }
 0x156   : > { %328 = vst [vmem:[%s957_s27 + $0x3d0] sm:$0xff] %v168_v30 }
 0x157   : > { %360 = vst [vmem:[%s957_s27 + $0x4d0] sm:$0xff] %v168_v30 }
 0x158   : > { %392 = vst [vmem:[%s957_s27 + $0x5d0] sm:$0xff] %v168_v30 }
 0x159   : > { %424 = vst [vmem:[%s957_s27 + $0x6d0] sm:$0xff] %v168_v30 }
 0x15a   : > { %456 = vst [vmem:[%s957_s27 + $0x7d0] sm:$0xff] %v168_v30 }
 0x15b   : > { %488 = vst [vmem:[%s957_s27 + $0x8d0] sm:$0xff] %v168_v30 }
 0x15c   : > { %520 = vst [vmem:[%s957_s27 + $0x9d0] sm:$0xff] %v168_v30 }
 0x15d   : > { %552 = vst [vmem:[%s957_s27 + $0xad0] sm:$0xff] %v168_v30 }
 0x15e   : > { %584 = vst [vmem:[%s957_s27 + $0xbd0] sm:$0xff] %v168_v30 }
 0x15f   : > { %233 = vst [vmem:[%s957_s27 + $0xd8] sm:$0xff] %v169_v31 }
 0x160   : > { %265 = vst [vmem:[%s957_s27 + $0x1d8] sm:$0xff] %v169_v31 }
 0x161   : > { %297 = vst [vmem:[%s957_s27 + $0x2d8] sm:$0xff] %v169_v31 }
 0x162   : > { %329 = vst [vmem:[%s957_s27 + $0x3d8] sm:$0xff] %v169_v31 }
 0x163   : > { %361 = vst [vmem:[%s957_s27 + $0x4d8] sm:$0xff] %v169_v31 }
 0x164   : > { %393 = vst [vmem:[%s957_s27 + $0x5d8] sm:$0xff] %v169_v31 }
 0x165   : > { %425 = vst [vmem:[%s957_s27 + $0x6d8] sm:$0xff] %v169_v31 }
 0x166   : > { %457 = vst [vmem:[%s957_s27 + $0x7d8] sm:$0xff] %v169_v31 }
 0x167   : > { %489 = vst [vmem:[%s957_s27 + $0x8d8] sm:$0xff] %v169_v31 }
 0x168   : > { %521 = vst [vmem:[%s957_s27 + $0x9d8] sm:$0xff] %v169_v31 }
 0x169   : > { %553 = vst [vmem:[%s957_s27 + $0xad8] sm:$0xff] %v169_v31 }
 0x16a   : > { %585 = vst [vmem:[%s957_s27 + $0xbd8] sm:$0xff] %v169_v31 }
 0x16b   : > { %234 = vst [vmem:[%s957_s27 + $0xe0] sm:$0xff] %v170_v32 }
 0x16c   : > { %266 = vst [vmem:[%s957_s27 + $0x1e0] sm:$0xff] %v170_v32 }
 0x16d   : > { %298 = vst [vmem:[%s957_s27 + $0x2e0] sm:$0xff] %v170_v32 }
 0x16e   : > { %330 = vst [vmem:[%s957_s27 + $0x3e0] sm:$0xff] %v170_v32 }
 0x16f   : > { %362 = vst [vmem:[%s957_s27 + $0x4e0] sm:$0xff] %v170_v32 }
 0x170   : > { %394 = vst [vmem:[%s957_s27 + $0x5e0] sm:$0xff] %v170_v32 }
 0x171   : > { %426 = vst [vmem:[%s957_s27 + $0x6e0] sm:$0xff] %v170_v32 }
 0x172   : > { %458 = vst [vmem:[%s957_s27 + $0x7e0] sm:$0xff] %v170_v32 }
 0x173   : > { %490 = vst [vmem:[%s957_s27 + $0x8e0] sm:$0xff] %v170_v32 }
 0x174   : > { %522 = vst [vmem:[%s957_s27 + $0x9e0] sm:$0xff] %v170_v32 }
 0x175   : > { %554 = vst [vmem:[%s957_s27 + $0xae0] sm:$0xff] %v170_v32 }
 0x176   : > { %586 = vst [vmem:[%s957_s27 + $0xbe0] sm:$0xff] %v170_v32 }
 0x177   : > { %235 = vst [vmem:[%s957_s27 + $0xe8] sm:$0xff] %v171_v33 }
 0x178   : > { %267 = vst [vmem:[%s957_s27 + $0x1e8] sm:$0xff] %v171_v33 }
 0x179   : > { %299 = vst [vmem:[%s957_s27 + $0x2e8] sm:$0xff] %v171_v33 }
 0x17a   : > { %331 = vst [vmem:[%s957_s27 + $0x3e8] sm:$0xff] %v171_v33 }
 0x17b   : > { %363 = vst [vmem:[%s957_s27 + $0x4e8] sm:$0xff] %v171_v33 }
 0x17c   : > { %395 = vst [vmem:[%s957_s27 + $0x5e8] sm:$0xff] %v171_v33 }
 0x17d   : > { %427 = vst [vmem:[%s957_s27 + $0x6e8] sm:$0xff] %v171_v33 }
 0x17e   : > { %459 = vst [vmem:[%s957_s27 + $0x7e8] sm:$0xff] %v171_v33 }
 0x17f   : > { %491 = vst [vmem:[%s957_s27 + $0x8e8] sm:$0xff] %v171_v33 }
 0x180   : > { %523 = vst [vmem:[%s957_s27 + $0x9e8] sm:$0xff] %v171_v33 }
 0x181   : > { %555 = vst [vmem:[%s957_s27 + $0xae8] sm:$0xff] %v171_v33 }
 0x182   : > { %587 = vst [vmem:[%s957_s27 + $0xbe8] sm:$0xff] %v171_v33 }
 0x183   : > { %236 = vst [vmem:[%s957_s27 + $0xf0] sm:$0xff] %v172_v34 }
 0x184   : > { %268 = vst [vmem:[%s957_s27 + $0x1f0] sm:$0xff] %v172_v34 }
 0x185   : > { %300 = vst [vmem:[%s957_s27 + $0x2f0] sm:$0xff] %v172_v34 }
 0x186   : > { %332 = vst [vmem:[%s957_s27 + $0x3f0] sm:$0xff] %v172_v34 }
 0x187   : > { %364 = vst [vmem:[%s957_s27 + $0x4f0] sm:$0xff] %v172_v34 }
 0x188   : > { %396 = vst [vmem:[%s957_s27 + $0x5f0] sm:$0xff] %v172_v34 }
 0x189   : > { %428 = vst [vmem:[%s957_s27 + $0x6f0] sm:$0xff] %v172_v34 }
 0x18a   : > { %460 = vst [vmem:[%s957_s27 + $0x7f0] sm:$0xff] %v172_v34 }
 0x18b   : > { %492 = vst [vmem:[%s957_s27 + $0x8f0] sm:$0xff] %v172_v34 }
 0x18c   : > { %524 = vst [vmem:[%s957_s27 + $0x9f0] sm:$0xff] %v172_v34 }
 0x18d   : > { %556 = vst [vmem:[%s957_s27 + $0xaf0] sm:$0xff] %v172_v34 }
 0x18e   : > { %588 = vst [vmem:[%s957_s27 + $0xbf0] sm:$0xff] %v172_v34 }
 0x18f   : > { %237 = vst [vmem:[%s957_s27 + $0xf8] sm:$0xff] %v173_v35 }
 0x190   : > { %269 = vst [vmem:[%s957_s27 + $0x1f8] sm:$0xff] %v173_v35 }
 0x191   : > { %301 = vst [vmem:[%s957_s27 + $0x2f8] sm:$0xff] %v173_v35 }
 0x192   : > { %333 = vst [vmem:[%s957_s27 + $0x3f8] sm:$0xff] %v173_v35 }
 0x193   : > { %365 = vst [vmem:[%s957_s27 + $0x4f8] sm:$0xff] %v173_v35 }
 0x194   : > { %397 = vst [vmem:[%s957_s27 + $0x5f8] sm:$0xff] %v173_v35 }
 0x195   : > { %429 = vst [vmem:[%s957_s27 + $0x6f8] sm:$0xff] %v173_v35 }
 0x196   : > { %461 = vst [vmem:[%s957_s27 + $0x7f8] sm:$0xff] %v173_v35 }
 0x197   : > { %493 = vst [vmem:[%s957_s27 + $0x8f8] sm:$0xff] %v173_v35 }
 0x198   : > { %525 = vst [vmem:[%s957_s27 + $0x9f8] sm:$0xff] %v173_v35 }
 0x199   : > { %557 = vst [vmem:[%s957_s27 + $0xaf8] sm:$0xff] %v173_v35 }
 0x19a   : > { %589 = vst [vmem:[%s957_s27 + $0xbf8] sm:$0xff] %v173_v35 }
 0x19b   : > { %823 = shalt.err (!%p820_p7)
}
 0x19c   : > { %s881_s22 = smov 4096   ;;  %s882_s23 = smov 256  }
 0x19d   : > { %702 = dma.vmem_to_hbm [thread:$0]  (%p933_p4), %s607_s3, 49152, %s609_s4, %s591_s5, %s881_s22, %s881_s22, %s882_s23  }
 0x19e PF: > { %p714_p9 = scmp.ge.s32.totalorder %s878_s11, 2  ;;  %s623_s24 = sand.u32 1, %s858_s6  }
 0x19f   : > { %s624_s25 = scalar_lea.sflag [#allocation4], %s623_s24 }
 0x1a0   : > { %p709_p10 = pnand %p714_p9, %p940_p8 }
 0x1a2   : > { %p710_p11 = pneg %p709_p10 }
 0x1a4   : > { %853 = dma.done.wait (%p710_p11), %s624_s25, 49152  }
 0x1a5   : > { %855 = vsyncadd (%p710_p11), %s624_s25, 4294918144  ;;  %s15_s11 = sadd.s32 1, %s878_s11   ;;  %s1423_s6 = smov %s862_s7 }
 0x1a6   : > { %p12_p12 = scmp.ge.s32.totalorder %s15_s11, 4   ;;  %s1424_s7 = smov %s866_s8 }
 0x1a7   : > { %s1425_s8 = smov %s946_s19  ;;  %s1426_s9 = smov %s874_s10 }
 0x1a8   : > { %s1427_s10 = smov %s1429_s14  ;;  %14 = sbr.rel (!%p12_p12) target bundleno = 5 (0x5), region = 62 }
 0x1ad   :  { %630 = vsyncpa [#allocation3], 1 }
 0x1ae   :  { %632 = vsyncpa [#allocation3 + $0x1], 1 }
 0x1af   :  { %633 = vsyncpa [#allocation4], 1 }
 0x1b0   :  { %635 = vsyncpa [#allocation4 + $0x1], 1 }

</bundles_post_ra>
